<compile_context>
chip_gen: v7x
topology: tpu7x:2x2x1
jax: 0.10.0
libtpu: 0.0.40
codegen_flags: <defaults>
</compile_context>

<pallas_src>
import jax
import jax.numpy as jnp
from jax.experimental import pallas as pl
from jax.experimental.pallas import tpu as pltpu


def _fused_add_relu_conv_kernel(a_ref, b_ref, w_ref, o_ref):
    # a_ref, b_ref: (1, Cin, M)   stride-2-subsampled input slabs (one batch)
    # w_ref:        (Cout, Cin)   1x1 conv weight, LHS orientation
    # o_ref:        (1, Cout, M)  lane-dense output slab
    x = jnp.maximum(a_ref[0] + b_ref[0], 0.0)            # add + ReLU (VPU), (Cin, M)
    o_ref[0] = jnp.dot(
        w_ref[...], x, preferred_element_type=jnp.float32  # (Cout,Cin)@(Cin,M) on MXU
    ).astype(o_ref.dtype)


def fused_add_relu_conv1x1_s2(x5, x19, weight):
    """x5, x19: (N, C, H, W) float32.  weight: (Cout, Cin, 1, 1) float32.
    Returns (N, Cout, ceil(H/2), ceil(W/2)) — same semantics as the PyTorch module."""
    N, C, H, W = x5.shape
    Cout = weight.shape[0]
    Ho, Wo = (H + 1) // 2, (W + 1) // 2
    M = Ho * Wo

    # Stride-2 subsample directly on NCHW (valid because the conv is 1x1/VALID and
    # add/ReLU are elementwise), then flatten spatial dims -> (N, C, Ho*Wo).
    a = x5[:, :, ::2, ::2].reshape(N, C, M)
    b = x19[:, :, ::2, ::2].reshape(N, C, M)
    w = weight.reshape(Cout, C)  # (Cout, Cin) — already the matmul LHS, no transpose

    out_flat = pl.pallas_call(
        _fused_add_relu_conv_kernel,
        out_shape=jax.ShapeDtypeStruct((N, Cout, M), x5.dtype),
        grid=(N,),
        in_specs=[
            pl.BlockSpec((1, C, M), lambda n: (n, 0, 0)),
            pl.BlockSpec((1, C, M), lambda n: (n, 0, 0)),
            pl.BlockSpec((Cout, C), lambda n: (0, 0)),
        ],
        out_specs=pl.BlockSpec((1, Cout, M), lambda n: (n, 0, 0)),
        compiler_params=pltpu.CompilerParams(
            dimension_semantics=("parallel",),
        ),
        cost_estimate=pl.CostEstimate(
            flops=2 * N * M * C * Cout,
            transcendentals=0,
            bytes_accessed=(2 * N * C * M + Cout * C + N * Cout * M) * 4,
        ),
    )(a, b, w)

    # (N, Cout, Ho*Wo) -> (N, Cout, Ho, Wo): pure reshape, already NCHW ordered.
    return out_flat.reshape(N, Cout, Ho, Wo)


if __name__ == "__main__":
    key = jax.random.PRNGKey(0)
    k1, k2, k3 = jax.random.split(key, 3)

    # Shapes implied by the module: (1, 48, 56, 56) inputs, Conv2d(48, 104, 1x1, stride 2)
    N, Cin, H, W, Cout = 1, 48, 56, 56, 104
    x5 = jax.random.normal(k1, (N, Cin, H, W), dtype=jnp.float32)
    x19 = jax.random.normal(k2, (N, Cin, H, W), dtype=jnp.float32)
    # Deterministic synthetic conv weight (PyTorch shape: (Cout, Cin, 1, 1))
    weight = (jax.random.normal(k3, (Cout, Cin, 1, 1), dtype=jnp.float32)
              * (1.0 / jnp.sqrt(Cin)))

    fused = jax.jit(fused_add_relu_conv1x1_s2)
    out = jax.block_until_ready(fused(x5, x19, weight))

    # Pure-JAX reference check
    relu = jnp.maximum(x5 + x19, 0.0)
    ref = jax.lax.conv_general_dilated(
        relu, weight, window_strides=(2, 2), padding="VALID",
        dimension_numbers=("NCHW", "OIHW", "NCHW"))
    assert out.shape == (N, Cout, H // 2, W // 2), out.shape
    assert jnp.allclose(out, ref, atol=1e-4, rtol=1e-4)

    print("KERNEL_OK")
</pallas_src>

<mosaic_0001>
module attributes {stable_mosaic.version = 11 : i64} {
  func.func @_fused_add_relu_conv_kernel(%arg0: i32, %arg1: memref<1x48x784xf32, #tpu.memory_space<vmem>>, %arg2: memref<1x48x784xf32, #tpu.memory_space<vmem>>, %arg3: memref<104x48xf32, #tpu.memory_space<vmem>>, %arg4: memref<1x104x784xf32, #tpu.memory_space<vmem>>) attributes {dimension_semantics = [#tpu.dimension_semantics<parallel>], iteration_bounds = array<i64: 1>, scalar_prefetch = 0 : i64, scratch_operands = 0 : i64, tpu.core_type = #tpu.core_type<tc>, window_params = [{transform_indices = @transform_0, window_bounds = array<i64: 1, 48, 784>}, {transform_indices = @transform_1, window_bounds = array<i64: 1, 48, 784>}, {pipeline_mode = #tpu.pipeline_mode<synchronous>, transform_indices = @transform_2, window_bounds = array<i64: 104, 48>}, {transform_indices = @transform_3, window_bounds = array<i64: 1, 104, 784>}]} {
    %c0 = arith.constant 0 : index
    %c0_0 = arith.constant 0 : index
    %c0_1 = arith.constant 0 : index
    %0 = vector.load %arg1[%c0, %c0_0, %c0_1] : memref<1x48x784xf32, #tpu.memory_space<vmem>>, vector<1x48x784xf32>
    %1 = vector.shape_cast %0 : vector<1x48x784xf32> to vector<48x784xf32>
    %c0_2 = arith.constant 0 : index
    %c0_3 = arith.constant 0 : index
    %c0_4 = arith.constant 0 : index
    %2 = vector.load %arg2[%c0_2, %c0_3, %c0_4] : memref<1x48x784xf32, #tpu.memory_space<vmem>>, vector<1x48x784xf32>
    %3 = vector.shape_cast %2 : vector<1x48x784xf32> to vector<48x784xf32>
    %4 = arith.addf %1, %3 : vector<48x784xf32>
    %cst = arith.constant 0.000000e+00 : f32
    %5 = vector.broadcast %cst : f32 to vector<48x784xf32>
    %6 = arith.maximumf %4, %5 : vector<48x784xf32>
    %c0_5 = arith.constant 0 : index
    %c0_6 = arith.constant 0 : index
    %7 = vector.load %arg3[%c0_5, %c0_6] : memref<104x48xf32, #tpu.memory_space<vmem>>, vector<104x48xf32>
    %cst_7 = arith.constant dense<0.000000e+00> : vector<104x784xf32>
    %8 = tpu.matmul %7, %6, %cst_7 {dimension_numbers = #tpu.dot_dimension_numbers<[1], [0], [0], [1], [0, 0, 1, 1], [], []>} : vector<104x48xf32>, vector<48x784xf32>, vector<104x784xf32> -> vector<104x784xf32>
    %c0_8 = arith.constant 0 : index
    %c0_9 = arith.constant 0 : index
    %c0_10 = arith.constant 0 : index
    %9 = vector.load %arg4[%c0_8, %c0_9, %c0_10] : memref<1x104x784xf32, #tpu.memory_space<vmem>>, vector<1x104x784xf32>
    %10 = vector.shape_cast %9 : vector<1x104x784xf32> to vector<104x784xf32>
    %11 = vector.shape_cast %8 : vector<104x784xf32> to vector<1x104x784xf32>
    tpu.vector_store %arg4[%c0_8, %c0_9, %c0_10], %11 {strides = array<i32>} : memref<1x104x784xf32, #tpu.memory_space<vmem>>, vector<1x104x784xf32>,
    return
  }
  func.func @transform_0(%arg0: i32) -> (i32, i32, i32) {
    %c0_i32 = arith.constant 0 : i32
    %c0_i32_0 = arith.constant 0 : i32
    %c0_i32_1 = arith.constant 0 : i32
    return %arg0, %c0_i32, %c0_i32_0 : i32, i32, i32
  }
  func.func @transform_1(%arg0: i32) -> (i32, i32, i32) {
    %c0_i32 = arith.constant 0 : i32
    %c0_i32_0 = arith.constant 0 : i32
    %c0_i32_1 = arith.constant 0 : i32
    return %arg0, %c0_i32, %c0_i32_0 : i32, i32, i32
  }
  func.func @transform_2(%arg0: i32) -> (i32, i32) {
    %c0_i32 = arith.constant 0 : i32
    %c0_i32_0 = arith.constant 0 : i32
    %c0_i32_1 = arith.constant 0 : i32
    return %c0_i32, %c0_i32_0 : i32, i32
  }
  func.func @transform_3(%arg0: i32) -> (i32, i32, i32) {
    %c0_i32 = arith.constant 0 : i32
    %c0_i32_0 = arith.constant 0 : i32
    %c0_i32_1 = arith.constant 0 : i32
    return %arg0, %c0_i32, %c0_i32_0 : i32, i32, i32
  }
}

</mosaic_0001>

<bundles_post_ra>
// kernel: fused_add_relu_conv1x1_s2.1
= control target key start
LH: loop header
LB: loop body
LE: loop exit
PB: predicated region body
PF: predicated region fallthrough
CT: control target
= control target key end

     0   :  { %v1060_v3 = vmov 0.0   ;;  %vm195_vm0 = vcmask 392192   ;;  %vm1062_vm1 = vmmov 0   ;;  %vm800_vm2 = vcmask 130048   ;;  %s1828_s0 = inlined_call_operand.vmem [shape: f32[1,48,784], index: 0, kind: input, shape index: {}]   ;;  %s1829_s1 = inlined_call_operand.vmem [shape: f32[1,48,784], index: 1, kind: input, shape index: {}]   ;;  %s1830_s2 = inlined_call_operand.vmem [shape: f32[104,48], index: 2, kind: input, shape index: {}]   ;;  %s1831_s3 = inlined_call_operand.vmem [shape: f32[1,104,784], index: 3, kind: output, shape index: {}]  }
   0x1   :  { %v15_v0 = vld [vmem:[%s1828_s0 + $0x8] sm:$0xff]  ;;  %v22_v1 = vld [vmem:[%s1828_s0 + $0x40] sm:$0xff]  ;;  %299 = vmatprep.mubr.f32.mxu0 %v1060_v3  ;;  %442 = vmatprep.mubr.f32.mxu1 %v1060_v3  ;;  %v21_v7 = vld [vmem:[%s1828_s0 + $0x38] sm:$0xff] }
   0x2   :  { %v57_v2 = vld [vmem:[%s1829_s1 + $0x8] sm:$0xff]  ;;  %v64_v4 = vld [vmem:[%s1829_s1 + $0x40] sm:$0xff]  ;;  %v63_v10 = vld [vmem:[%s1829_s1 + $0x38] sm:$0xff] }
   0x3   :  { %v99_v5 = vadd.f32 %v57_v2, %v15_v0  ;;  %v14_v6 = vld [vmem:[%s1828_s0] sm:$0xff]  ;;  %v106_v8 = vadd.f32 %v64_v4, %v22_v1  ;;  %v17_v11 = vld [vmem:[%s1828_s0 + $0x18] sm:$0xff]  ;;  %v105_v14 = vadd.f32 %v63_v10, %v21_v7  ;;  %v24_v15 = vld [vmem:[%s1828_s0 + $0x50] sm:$0xff] }
   0x4   :  { %v56_v9 = vld [vmem:[%s1829_s1] sm:$0xff]  ;;  %v59_v16 = vld [vmem:[%s1829_s1 + $0x18] sm:$0xff]  ;;  %v66_v17 = vld [vmem:[%s1829_s1 + $0x50] sm:$0xff] }
   0x5   :  { %v141_v12 = vmax.f32 %v99_v5, 0.0  ;;  %v98_v13 = vadd.f32 %v56_v9, %v14_v6  ;;  %v148_v18 = vmax.f32 %v106_v8, 0.0  ;;  %v101_v19 = vadd.f32 %v59_v16, %v17_v11  ;;  %v16_v21 = vld [vmem:[%s1828_s0 + $0x10] sm:$0xff]  ;;  %v23_v22 = vld [vmem:[%s1828_s0 + $0x48] sm:$0xff]  ;;  %v29_v28 = vld [vmem:[%s1828_s0 + $0x78] sm:$0xff] }
   0x6   :  { %v108_v20 = vadd.f32 %v66_v17, %v24_v15  ;;  %v58_v23 = vld [vmem:[%s1829_s1 + $0x10] sm:$0xff]  ;;  %v147_v25 = vmax.f32 %v105_v14, 0.0  ;;  %v65_v26 = vld [vmem:[%s1829_s1 + $0x48] sm:$0xff]  ;;  %v71_v34 = vld [vmem:[%s1829_s1 + $0x78] sm:$0xff] }
   0x7   :  { %v140_v24 = vmax.f32 %v98_v13, 0.0  ;;  %v100_v27 = vadd.f32 %v58_v23, %v16_v21  ;;  %v36_v29 = vld [vmem:[%s1828_s0 + $0xb0] sm:$0xff]  ;;  %v1012_v30 = vpack.c.bf16 %v148_v18, %v141_v12  ;;  %v143_v31 = vmax.f32 %v101_v19, 0.0  ;;  %v35_v41 = vld [vmem:[%s1828_s0 + $0xa8] sm:$0xff]  ;;  %v38_v49 = vld [vmem:[%s1828_s0 + $0xc0] sm:$0xff] }
   0x8   :  { %v150_v32 = vmax.f32 %v108_v20, 0.0  ;;  %v107_v33 = vadd.f32 %v65_v26, %v23_v22  ;;  %v78_v35 = vld [vmem:[%s1829_s1 + $0xb0] sm:$0xff]  ;;  %v113_v39 = vadd.f32 %v71_v34, %v29_v28  ;;  %v77_v43 = vld [vmem:[%s1829_s1 + $0xa8] sm:$0xff]  ;;  %v80_v53 = vld [vmem:[%s1829_s1 + $0xc0] sm:$0xff] }
   0x9   :  { %v28_v36 = vld [vmem:[%s1828_s0 + $0x70] sm:$0xff]  ;;  %v1014_v37 = vpack.c.bf16 %v147_v25, %v140_v24  ;;  %v142_v38 = vmax.f32 %v100_v27, 0.0  ;;  %v120_v40 = vadd.f32 %v78_v35, %v36_v29  ;;  %1013 = vmatprep.subr.bf16.mxu0 %v1012_v30  ;;  %v119_v47 = vadd.f32 %v77_v43, %v35_v41  ;;  %v31_v48 = vld [vmem:[%s1828_s0 + $0x88] sm:$0xff]  ;;  %v30_v55 = vld [vmem:[%s1828_s0 + $0x80] sm:$0xff] }
   0xa   :  { %v70_v42 = vld [vmem:[%s1829_s1 + $0x70] sm:$0xff]  ;;  %v1024_v44 = vpack.c.bf16 %v150_v32, %v143_v31  ;;  %v149_v45 = vmax.f32 %v107_v33, 0.0  ;;  %v73_v50 = vld [vmem:[%s1829_s1 + $0x88] sm:$0xff]  ;;  %v155_v51 = vmax.f32 %v113_v39, 0.0  ;;  %v37_v56 = vld [vmem:[%s1828_s0 + $0xb8] sm:$0xff]  ;;  %v122_v60 = vadd.f32 %v80_v53, %v38_v49 }
   0xb   :  { %v112_v46 = vadd.f32 %v70_v42, %v28_v36  ;;  %1015 = vmatpush1.bf16.msra.mxu0 %v1014_v37  ;;  %v162_v52 = vmax.f32 %v120_v40, 0.0  ;;  %v115_v54 = vadd.f32 %v73_v50, %v31_v48  ;;  %v161_v59 = vmax.f32 %v119_v47, 0.0  ;;  %v72_v61 = vld [vmem:[%s1829_s1 + $0x80] sm:$0xff]  ;;  %v79_v62 = vld [vmem:[%s1829_s1 + $0xb8] sm:$0xff]  ;;  %v43_v63 = vld [vmem:[%s1828_s0 + $0xe8] sm:$0xff] }
   0xc   :  { %1025 = vmatprep.subr.bf16.mxu1 %v1024_v44  ;;  %v1026_v57 = vpack.c.bf16 %v149_v45, %v142_v38  ;;  %v114_v2 = vadd.f32 %v72_v61, %v30_v55  ;;  %v121_v4 = vadd.f32 %v79_v62, %v37_v56  ;;  %v50_v5 = vld [vmem:[%s1828_s0 + $0x120] sm:$0xff]  ;;  %v85_v6 = vld [vmem:[%s1829_s1 + $0xe8] sm:$0xff]  ;;  %v164_v9 = vmax.f32 %v122_v60, 0.0  ;;  %v49_v13 = vld [vmem:[%s1828_s0 + $0x118] sm:$0xff] }
   0xd   :  { %v154_v58 = vmax.f32 %v112_v46, 0.0  ;;  %v1016_v0 = vpack.c.bf16 %v162_v52, %v155_v51  ;;  %v157_v1 = vmax.f32 %v115_v54, 0.0  ;;  %v92_v7 = vld [vmem:[%s1829_s1 + $0x120] sm:$0xff]  ;;  %v127_v10 = vadd.f32 %v85_v6, %v43_v63  ;;  %v91_v17 = vld [vmem:[%s1829_s1 + $0x118] sm:$0xff]  ;;  %v52_v20 = vld [vmem:[%s1828_s0 + $0x130] sm:$0xff] }
   0xe   :  { %1027 = vmatpush1.bf16.msra.mxu1 %v1026_v57  ;;  %v134_v11 = vadd.f32 %v92_v7, %v50_v5  ;;  %v42_v12 = vld [vmem:[%s1828_s0 + $0xe0] sm:$0xff]  ;;  %v156_v15 = vmax.f32 %v114_v2, 0.0  ;;  %v163_v16 = vmax.f32 %v121_v4, 0.0  ;;  %v45_v19 = vld [vmem:[%s1828_s0 + $0xf8] sm:$0xff]  ;;  %v133_v24 = vadd.f32 %v91_v17, %v49_v13  ;;  %v94_v26 = vld [vmem:[%s1829_s1 + $0x130] sm:$0xff] }
   0xf   :  { %v1018_v8 = vpack.c.bf16 %v161_v59, %v154_v58  ;;  %v84_v14 = vld [vmem:[%s1829_s1 + $0xe0] sm:$0xff]  ;;  %1017 = vmatprep.subr.bf16.mxu0 %v1016_v0  ;;  %v1028_v21 = vpack.c.bf16 %v164_v9, %v157_v1  ;;  %v169_v22 = vmax.f32 %v127_v10, 0.0  ;;  %v87_v25 = vld [vmem:[%s1829_s1 + $0xf8] sm:$0xff]  ;;  %v44_v27 = vld [vmem:[%s1828_s0 + $0xf0] sm:$0xff]  ;;  %v136_v31 = vadd.f32 %v94_v26, %v52_v20 }
  0x10   :  { %v126_v18 = vadd.f32 %v84_v14, %v42_v12  ;;  %v176_v23 = vmax.f32 %v134_v11, 0.0  ;;  %v1030_v28 = vpack.c.bf16 %v163_v16, %v156_v15  ;;  %v129_v30 = vadd.f32 %v87_v25, %v45_v19  ;;  %v51_v32 = vld [vmem:[%s1828_s0 + $0x128] sm:$0xff]  ;;  %v86_v33 = vld [vmem:[%s1829_s1 + $0xf0] sm:$0xff]  ;;  %v26_v40 = vld [vmem:[%s1828_s0 + $0x60] sm:$0xff] }
  0x11   :  { %1019 = vmatpush1.bf16.msra.mxu0 %v1018_v8  ;;  %v93_v34 = vld [vmem:[%s1829_s1 + $0x128] sm:$0xff]  ;;  %1029 = vmatprep.subr.bf16.mxu1 %v1028_v21  ;;  %v175_v36 = vmax.f32 %v133_v24, 0.0  ;;  %v128_v37 = vadd.f32 %v86_v33, %v44_v27  ;;  %v178_v42 = vmax.f32 %v136_v31, 0.0  ;;  %v68_v44 = vld [vmem:[%s1829_s1 + $0x60] sm:$0xff]  ;;  %v25_v50 = vld [vmem:[%s1828_s0 + $0x58] sm:$0xff]  ;;  %v1061_v13 = vmov 0.0|0.0  }
  0x12   :  { %v168_v29 = vmax.f32 %v126_v18, 0.0  ;;  %v1020_v35 = vpack.c.bf16 %v176_v23, %v169_v22  ;;  %v135_v38 = vadd.f32 %v93_v34, %v51_v32  ;;  %v19_v39 = vld [vmem:[%s1828_s0 + $0x28] sm:$0xff]  ;;  %1031 = vmatpush1.bf16.msra.mxu1 %v1030_v28  ;;  %v171_v41 = vmax.f32 %v129_v30, 0.0  ;;  %v18_v45 = vld [vmem:[%s1828_s0 + $0x20] sm:$0xff]  ;;  %v67_v52 = vld [vmem:[%s1829_s1 + $0x58] sm:$0xff] }
  0x13   :  { %v61_v43 = vld [vmem:[%s1829_s1 + $0x28] sm:$0xff]  ;;  %v170_v47 = vmax.f32 %v128_v37, 0.0  ;;  %v60_v51 = vld [vmem:[%s1829_s1 + $0x20] sm:$0xff]  ;;  %v110_v54 = vadd.f32 %v68_v44, %v26_v40  ;;  %v109_v56 = vadd.f32 %v67_v52, %v25_v50  ;;  %v20_v57 = vld [vmem:[%s1828_s0 + $0x30] sm:$0xff] }
  0x14   :  { %1021 = vmatprep.subr.bf16.mxu0 %v1020_v35  ;;  %v1022_v46 = vpack.c.bf16 %v175_v36, %v168_v29  ;;  %v177_v48 = vmax.f32 %v135_v38, 0.0  ;;  %v103_v49 = vadd.f32 %v61_v43, %v19_v39  ;;  %v1032_v53 = vpack.c.bf16 %v178_v42, %v171_v41  ;;  %v27_v58 = vld [vmem:[%s1828_s0 + $0x68] sm:$0xff]  ;;  %v62_v59 = vld [vmem:[%s1829_s1 + $0x30] sm:$0xff]  ;;  %v1265_v61 = vld [vmem:[%s1830_s2] sm:$0xff] }
  0x15   :  { %v102_v55 = vadd.f32 %v60_v51, %v18_v45  ;;  %v69_v63 = vld [vmem:[%s1829_s1 + $0x68] sm:$0xff]  ;;  %v104_v0 = vadd.f32 %v62_v59, %v20_v57  ;;  %v152_v1 = vmax.f32 %v110_v54, 0.0  ;;  %v151_v4 = vmax.f32 %v109_v56, 0.0  ;;  %v33_v6 = vld [vmem:[%s1828_s0 + $0x98] sm:$0xff]  ;;  %v40_v8 = vld [vmem:[%s1828_s0 + $0xd0] sm:$0xff] }
  0x16   :  { %1023 = vmatpush1.bf16.msra.mxu0 %v1022_v46  ;;  %v1034_v60 = vpack.c.bf16 %v177_v48, %v170_v47  ;;  %v145_v62 = vmax.f32 %v103_v49, 0.0  ;;  %1033 = vmatprep.subr.bf16.mxu1 %v1032_v53  ;;  %v111_v5 = vadd.f32 %v69_v63, %v27_v58  ;;  %v75_v9 = vld [vmem:[%s1829_s1 + $0x98] sm:$0xff]  ;;  %v82_v10 = vld [vmem:[%s1829_s1 + $0xd0] sm:$0xff]  ;;  %v39_v17 = vld [vmem:[%s1828_s0 + $0xc8] sm:$0xff] }
  0x17   :  { %v144_v2 = vmax.f32 %v102_v55, 0.0  ;;  %v146_v7 = vmax.f32 %v104_v0, 0.0  ;;  %v117_v15 = vadd.f32 %v75_v9, %v33_v6  ;;  %v32_v16 = vld [vmem:[%s1828_s0 + $0x90] sm:$0xff]  ;;  %v1298_v19 = vld [vmem:[%s1830_s2 + $0x8] sm:$0xff]  ;;  %v124_v20 = vadd.f32 %v82_v10, %v40_v8  ;;  %v34_v23 = vld [vmem:[%s1828_s0 + $0xa0] sm:$0xff] }
  0x18   :  { %1035 = vmatpush1.bf16.msra.mxu1 %v1034_v60  ;;  %v1036_v11 = vpack.c.bf16 %v152_v1, %v145_v62  ;;  %v153_v14 = vmax.f32 %v111_v5, 0.0  ;;  %v74_v18 = vld [vmem:[%s1829_s1 + $0x90] sm:$0xff]  ;;  %v81_v21 = vld [vmem:[%s1829_s1 + $0xc8] sm:$0xff]  ;;  %v41_v27 = vld [vmem:[%s1828_s0 + $0xd8] sm:$0xff] }
  0x19   :  { %890 = vmatmul.mubr.msk.f32.vlgmr.msra.gmra.mrb[0].mxu0 %vm195_vm0, %v1265_v61  ;;  %v1038_v12 = vpack.c.bf16 %v151_v4, %v144_v2  ;;  %1048 = vmatprep.subr.bf16.mxu1 %v1061_v13  ;;  %v116_v22 = vadd.f32 %v74_v18, %v32_v16  ;;  %v159_v25 = vmax.f32 %v117_v15, 0.0  ;;  %v123_v26 = vadd.f32 %v81_v21, %v39_v17  ;;  %v76_v28 = vld [vmem:[%s1829_s1 + $0xa0] sm:$0xff]  ;;  %v83_v29 = vld [vmem:[%s1829_s1 + $0xd8] sm:$0xff]  ;;  %v47_v35 = vld [vmem:[%s1828_s0 + $0x108] sm:$0xff] }
  0x1a   :  { %305 = vmatprep.mubr.f32.mxu0 %v1060_v3  ;;  %1037 = vmatprep.subr.bf16.mxu0 %v1036_v11  ;;  %v1049_v24 = vpack.c.bf16 %v153_v14, %v146_v7  ;;  %v166_v30 = vmax.f32 %v124_v20, 0.0  ;;  %v118_v32 = vadd.f32 %v76_v28, %v34_v23  ;;  %v125_v33 = vadd.f32 %v83_v29, %v41_v27  ;;  %v54_v36 = vld [vmem:[%s1828_s0 + $0x140] sm:$0xff]  ;;  %v89_v37 = vld [vmem:[%s1829_s1 + $0x108] sm:$0xff]  ;;  %v1333_v38 = vld [vmem:[%s1830_s2 + $0x10] sm:$0xff] }
  0x1b   :  { %903 = vmatmul.mubr.msk.f32.vlgmr.msra.gmra.mrb[0].mxu1 %vm195_vm0, %v1265_v61  ;;  %1039 = vmatpush1.bf16.msra.mxu0 %v1038_v12  ;;  %v158_v31 = vmax.f32 %v116_v22, 0.0  ;;  %v165_v34 = vmax.f32 %v123_v26, 0.0  ;;  %v96_v42 = vld [vmem:[%s1829_s1 + $0x140] sm:$0xff]  ;;  %v131_v43 = vadd.f32 %v89_v37, %v47_v35  ;;  %v53_v47 = vld [vmem:[%s1828_s0 + $0x138] sm:$0xff]  ;;  %v48_v54 = vld [vmem:[%s1828_s0 + $0x110] sm:$0xff] }
  0x1c   :  { %448 = vmatprep.mubr.f32.mxu1 %v1060_v3  ;;  %1050 = vmatpush3.bf16.msra.mxu1 %v1049_v24  ;;  %v1040_v39 = vpack.c.bf16 %v166_v30, %v159_v25  ;;  %v160_v40 = vmax.f32 %v118_v32, 0.0  ;;  %v167_v41 = vmax.f32 %v125_v33, 0.0  ;;  %v46_v44 = vld [vmem:[%s1828_s0 + $0x100] sm:$0xff]  ;;  %v138_v46 = vadd.f32 %v96_v42, %v54_v36  ;;  %v95_v49 = vld [vmem:[%s1829_s1 + $0x138] sm:$0xff]  ;;  %v55_v55 = vld [vmem:[%s1828_s0 + $0x148] sm:$0xff] }
  0x1d   :  { %891 = vmatmul.mubr.msk.f32.gmra.mrb[2].mxu0 %vm195_vm0, %v1298_v19  ;;  %1051 = vmatprep.subr.bf16.mxu1 %v1061_v13  ;;  %v1042_v45 = vpack.c.bf16 %v165_v34, %v158_v31  ;;  %v88_v48 = vld [vmem:[%s1829_s1 + $0x100] sm:$0xff]  ;;  %v173_v51 = vmax.f32 %v131_v43, 0.0  ;;  %v137_v53 = vadd.f32 %v95_v49, %v53_v47  ;;  %v90_v56 = vld [vmem:[%s1829_s1 + $0x110] sm:$0xff]  ;;  %v97_v58 = vld [vmem:[%s1829_s1 + $0x148] sm:$0xff] }
  0x1e   :  { %311 = vmatprep.mubr.f32.mxu0 %v1060_v3  ;;  %1041 = vmatprep.subr.bf16.mxu0 %v1040_v39  ;;  %v1052_v50 = vpack.c.bf16 %v167_v41, %v160_v40  ;;  %v130_v52 = vadd.f32 %v88_v48, %v46_v44  ;;  %v180_v57 = vmax.f32 %v138_v46, 0.0  ;;  %v132_v59 = vadd.f32 %v90_v56, %v48_v54  ;;  %v1372_v60 = vld [vmem:[%s1830_s2 + $0x18] sm:$0xff]  ;;  %v1383_v6 = vld [vmem:[%s1830_s2 + $0x20] sm:$0xff]  ;;  %v1395_v8 = vld [vmem:[%s1830_s2 + $0x28] sm:$0xff] }
  0x1f   :  { %904 = vmatmul.mubr.msk.f32.gmra.mrb[2].mxu1 %vm195_vm0, %v1298_v19  ;;  %1043 = vmatpush1.bf16.msra.mxu0 %v1042_v45  ;;  %v179_v63 = vmax.f32 %v137_v53, 0.0  ;;  %v139_v0 = vadd.f32 %v97_v58, %v55_v55  ;;  %v1406_v9 = vld [vmem:[%s1830_s2 + $0x30] sm:$0xff]  ;;  %v1417_v10 = vld [vmem:[%s1830_s2 + $0x38] sm:$0xff]  ;;  %v190_v11 = vld [vmem:[%s1830_s2 + $0x40] sm:$0xff] }
  0x20   :  { %454 = vmatprep.mubr.f32.mxu1 %v1060_v3  ;;  %v172_v62 = vmax.f32 %v130_v52, 0.0  ;;  %v1044_v1 = vpack.c.bf16 %v180_v57, %v173_v51  ;;  %v174_v2 = vmax.f32 %v132_v59, 0.0  ;;  %1053 = vmatpush3.bf16.msra.mxu1 %v1052_v50  ;;  %v191_v12 = vld [vmem:[%s1830_s2 + $0x48] sm:$0xff]  ;;  %v193_v14 = vld [vmem:[%s1830_s2 + $0x58] sm:$0xff]  ;;  %v194_v15 = vld [vmem:[%s1830_s2 + $0x60] sm:$0xff] }
  0x21   :  { %892 = vmatmul.mubr.msk.f32.gmra.mrb[4].mxu0 %vm195_vm0, %v1333_v38  ;;  %v181_v5 = vmax.f32 %v139_v0, 0.0  ;;  %1054 = vmatprep.subr.bf16.mxu1 %v1061_v13  ;;  %v192_v13 = vld [vmem:[%s1830_s2 + $0x50] sm:$0xff] }
  0x22   :  { %317 = vmatprep.mubr.f32.mxu0 %v1060_v3  ;;  %v1046_v4 = vpack.c.bf16 %v179_v63, %v172_v62  ;;  %1045 = vmatprep.subr.bf16.mxu0 %v1044_v1 }
  0x23   :  { %905 = vmatmul.mubr.msk.f32.gmra.mrb[4].mxu1 %vm195_vm0, %v1333_v38  ;;  %v1055_v7 = vpack.c.bf16 %v181_v5, %v174_v2 }
  0x24   :  { %460 = vmatprep.mubr.f32.mxu1 %v1060_v3  ;;  %1047 = vmatpush1.bf16.msra.mxu0 %v1046_v4 }
  0x25   :  { %893 = vmatmul.mubr.msk.f32.gmra.mrb[6].mxu0 %vm195_vm0, %v1372_v60  ;;  %1056 = vmatpush3.bf16.msra.mxu1 %v1055_v7 }
  0x26   :  { %323 = vmatprep.mubr.f32.mxu0 %v1060_v3 }
  0x27   :  { %906 = vmatmul.mubr.msk.f32.gmra.mrb[6].mxu1 %vm195_vm0, %v1372_v60 }
  0x28   :  { %466 = vmatprep.mubr.f32.mxu1 %v1060_v3 }
  0x29   :  { %894 = vmatmul.mubr.msk.f32.gmra.mrb[8].mxu0 %vm195_vm0, %v1383_v6 }
  0x2a   :  { %329 = vmatprep.mubr.f32.mxu0 %v1060_v3 }
  0x2b   :  { %907 = vmatmul.mubr.msk.f32.gmra.mrb[8].mxu1 %vm195_vm0, %v1383_v6 }
  0x2c   :  { %472 = vmatprep.mubr.f32.mxu1 %v1060_v3 }
  0x2d   :  { %895 = vmatmul.mubr.msk.f32.gmra.mrb[10].mxu0 %vm195_vm0, %v1395_v8 }
  0x2e   :  { %335 = vmatprep.mubr.f32.mxu0 %v1060_v3 }
  0x2f   :  { %908 = vmatmul.mubr.msk.f32.gmra.mrb[10].mxu1 %vm195_vm0, %v1395_v8 }
  0x30   :  { %478 = vmatprep.mubr.f32.mxu1 %v1060_v3 }
  0x31   :  { %896 = vmatmul.mubr.msk.f32.gmra.mrb[12].mxu0 %vm195_vm0, %v1406_v9 }
  0x32   :  { %341 = vmatprep.mubr.f32.mxu0 %v1060_v3 }
  0x33   :  { %909 = vmatmul.mubr.msk.f32.gmra.mrb[12].mxu1 %vm195_vm0, %v1406_v9 }
  0x34   :  { %484 = vmatprep.mubr.f32.mxu1 %v1060_v3 }
  0x35   :  { %897 = vmatmul.mubr.msk.f32.gmra.mrb[14].mxu0 %vm195_vm0, %v1417_v10 }
  0x36   :  { %347 = vmatprep.mubr.f32.mxu0 %v1060_v3 }
  0x37   :  { %910 = vmatmul.mubr.msk.f32.gmra.mrb[14].mxu1 %vm195_vm0, %v1417_v10 }
  0x38   :  { %490 = vmatprep.mubr.f32.mxu1 %v1060_v3 }
  0x39   :  { %898 = vmatmul.mubr.msk.f32.gmra.mrb[16].mxu0 %vm195_vm0, %v190_v11 }
  0x3a   :  { %353 = vmatprep.mubr.f32.mxu0 %v1060_v3 }
  0x3b   :  { %911 = vmatmul.mubr.msk.f32.gmra.mrb[16].mxu1 %vm195_vm0, %v190_v11 }
  0x3c   :  { %496 = vmatprep.mubr.f32.mxu1 %v1060_v3 }
  0x3d   :  { %899 = vmatmul.mubr.msk.f32.gmra.mrb[18].mxu0 %vm195_vm0, %v191_v12 }
  0x3e   :  { %359 = vmatprep.mubr.f32.mxu0 %v1060_v3 }
  0x3f   :  { %912 = vmatmul.mubr.msk.f32.gmra.mrb[18].mxu1 %vm195_vm0, %v191_v12 }
  0x40   :  { %502 = vmatprep.mubr.f32.mxu1 %v1060_v3 }
  0x41   :  { %900 = vmatmul.mubr.msk.f32.gmra.mrb[20].mxu0 %vm195_vm0, %v192_v13 }
  0x42   :  { %365 = vmatprep.mubr.f32.mxu0 %v1060_v3 }
  0x43   :  { %913 = vmatmul.mubr.msk.f32.gmra.mrb[20].mxu1 %vm195_vm0, %v192_v13 }
  0x44   :  { %508 = vmatprep.mubr.f32.mxu1 %v1060_v3 }
  0x45   :  { %901 = vmatmul.mubr.msk.f32.gmra.mrb[22].mxu0 %vm195_vm0, %v193_v14 }
  0x46   :  { %371 = vmatprep.mubr.f32.mxu0 %v1060_v3 }
  0x47   :  { %914 = vmatmul.mubr.msk.f32.gmra.mrb[22].mxu1 %vm195_vm0, %v193_v14 }
  0x48   :  { %514 = vmatprep.mubr.f32.mxu1 %v1060_v3 }
  0x49   :  { %902 = vmatmul.mubr.msk.f32.gmra.mrb[24].mxu0 %vm195_vm0, %v194_v15 }
  0x4a   :  { %585 = vmatprep.mubr.f32.mxu0 %v1060_v3 }
  0x4b   :  { %915 = vmatmul.mubr.msk.f32.gmra.mrb[24].mxu1 %vm195_vm0, %v194_v15 }
  0x4c   :  { %973 = vmatprep.mubr.msk.f32.mxu1 %vm1062_vm1, %v1060_v3 }
  0x4d   :  { %916 = vmatmul.mubr.msk.f32.vlgmr.msra.gmra.mrb[26].mxu0 %vm195_vm0, %v1265_v61 }
  0x4e   :  { %591 = vmatprep.mubr.f32.mxu0 %v1060_v3 }
  0x4f   :  { %974 = vmatmul.mubr.msk.f32.vlgmr.msra.gmra.mrb[26].mxu1 %vm195_vm0, %v1265_v61 }
  0x50   :  { %976 = vmatprep.mubr.msk.f32.mxu1 %vm1062_vm1, %v1060_v3 }
  0x51   :  { %917 = vmatmul.mubr.msk.f32.gmra.mrb[28].mxu0 %vm195_vm0, %v1298_v19 }
  0x52   :  { %597 = vmatprep.mubr.f32.mxu0 %v1060_v3 }
  0x53   :  { %977 = vmatmul.mubr.msk.f32.gmra.mrb[28].mxu1 %vm195_vm0, %v1298_v19 }
  0x54   :  { %979 = vmatprep.mubr.msk.f32.mxu1 %vm1062_vm1, %v1060_v3 }
  0x55   :  { %918 = vmatmul.mubr.msk.f32.gmra.mrb[30].mxu0 %vm195_vm0, %v1333_v38 }
  0x56   :  { %603 = vmatprep.mubr.f32.mxu0 %v1060_v3 }
  0x57   :  { %980 = vmatmul.mubr.msk.f32.gmra.mrb[30].mxu1 %vm195_vm0, %v1333_v38 }
  0x58   :  { %982 = vmatprep.mubr.msk.f32.mxu1 %vm1062_vm1, %v1060_v3 }
  0x59   :  { %919 = vmatmul.mubr.msk.f32.gmra.mrb[32].mxu0 %vm195_vm0, %v1372_v60 }
  0x5a   :  { %609 = vmatprep.mubr.f32.mxu0 %v1060_v3 }
  0x5b   :  { %983 = vmatmul.mubr.msk.f32.gmra.mrb[32].mxu1 %vm195_vm0, %v1372_v60 }
  0x5c   :  { %985 = vmatprep.mubr.msk.f32.mxu1 %vm1062_vm1, %v1060_v3 }
  0x5d   :  { %920 = vmatmul.mubr.msk.f32.gmra.mrb[34].mxu0 %vm195_vm0, %v1383_v6 }
  0x5e   :  { %615 = vmatprep.mubr.f32.mxu0 %v1060_v3 }
  0x5f   :  { %986 = vmatmul.mubr.msk.f32.gmra.mrb[34].mxu1 %vm195_vm0, %v1383_v6 }
  0x60   :  { %988 = vmatprep.mubr.msk.f32.mxu1 %vm1062_vm1, %v1060_v3 }
  0x61   :  { %921 = vmatmul.mubr.msk.f32.gmra.mrb[36].mxu0 %vm195_vm0, %v1395_v8 }
  0x62   :  { %621 = vmatprep.mubr.f32.mxu0 %v1060_v3 }
  0x63   :  { %989 = vmatmul.mubr.msk.f32.gmra.mrb[36].mxu1 %vm195_vm0, %v1395_v8 }
  0x64   :  { %991 = vmatprep.mubr.msk.f32.mxu1 %vm1062_vm1, %v1060_v3 }
  0x65   :  { %922 = vmatmul.mubr.msk.f32.gmra.mrb[38].mxu0 %vm195_vm0, %v1406_v9 }
  0x66   :  { %627 = vmatprep.mubr.f32.mxu0 %v1060_v3 }
  0x67   :  { %992 = vmatmul.mubr.msk.f32.gmra.mrb[38].mxu1 %vm195_vm0, %v1406_v9 }
  0x68   :  { %994 = vmatprep.mubr.msk.f32.mxu1 %vm1062_vm1, %v1060_v3 }
  0x69   :  { %923 = vmatmul.mubr.msk.f32.gmra.mrb[40].mxu0 %vm195_vm0, %v1417_v10 }
  0x6a   :  { %633 = vmatprep.mubr.f32.mxu0 %v1060_v3 }
  0x6b   :  { %995 = vmatmul.mubr.msk.f32.gmra.mrb[40].mxu1 %vm195_vm0, %v1417_v10 }
  0x6c   :  { %997 = vmatprep.mubr.msk.f32.mxu1 %vm1062_vm1, %v1060_v3 }
  0x6d   :  { %924 = vmatmul.mubr.msk.f32.gmra.mrb[42].mxu0 %vm195_vm0, %v190_v11 }
  0x6e   :  { %639 = vmatprep.mubr.f32.mxu0 %v1060_v3 }
  0x6f   :  { %998 = vmatmul.mubr.msk.f32.gmra.mrb[42].mxu1 %vm195_vm0, %v190_v11 }
  0x70   :  { %1000 = vmatprep.mubr.msk.f32.mxu1 %vm1062_vm1, %v1060_v3 }
  0x71   :  { %925 = vmatmul.mubr.msk.f32.gmra.mrb[44].mxu0 %vm195_vm0, %v191_v12 }
  0x72   :  { %645 = vmatprep.mubr.f32.mxu0 %v1060_v3 }
  0x73   :  { %1001 = vmatmul.mubr.msk.f32.gmra.mrb[44].mxu1 %vm195_vm0, %v191_v12 }
  0x74   :  { %1003 = vmatprep.mubr.msk.f32.mxu1 %vm1062_vm1, %v1060_v3 }
  0x75   :  { %926 = vmatmul.mubr.msk.f32.gmra.mrb[46].mxu0 %vm195_vm0, %v192_v13 }
  0x76   :  { %651 = vmatprep.mubr.f32.mxu0 %v1060_v3 }
  0x77   :  { %1004 = vmatmul.mubr.msk.f32.gmra.mrb[46].mxu1 %vm195_vm0, %v192_v13 }
  0x78   :  { %1006 = vmatprep.mubr.msk.f32.mxu1 %vm1062_vm1, %v1060_v3 }
  0x79   :  { %927 = vmatmul.mubr.msk.f32.gmra.mrb[48].mxu0 %vm195_vm0, %v193_v14 }
  0x7a   :  { %657 = vmatprep.mubr.f32.mxu0 %v1060_v3 }
  0x7b   :  { %1007 = vmatmul.mubr.msk.f32.gmra.mrb[48].mxu1 %vm195_vm0, %v193_v14 }
  0x7c   :  { %1009 = vmatprep.mubr.msk.f32.mxu1 %vm1062_vm1, %v1060_v3 }
  0x7d   :  { %928 = vmatmul.mubr.msk.f32.gmra.mrb[50].mxu0 %vm195_vm0, %v194_v15 }
  0x7f   :  { %1010 = vmatmul.mubr.msk.f32.gmra.mrb[50].mxu1 %vm195_vm0, %v194_v15 }
  0xec   :  { %v301_v61 = vpop.f32.mrb[0].mxu0 }
  0xed   :  { %794 = vst [vmem:[%s1831_s3] sm:$0xff] %v301_v61  ;;  %v303_v16 = vpop.f32.mrb[1].mxu0 }
  0xee   :  { %795 = vst [vmem:[%s1831_s3 + $0x8] sm:$0xff] %v303_v16  ;;  %v444_v17 = vpop.f32.mrb[0].mxu1 }
  0xef   :  { %796 = vst [vmem:[%s1831_s3 + $0x10] sm:$0xff] %v444_v17  ;;  %v446_v3 = vpop.f32.mrb[1].mxu1 }
  0xf0   :  { %797 = vst [vmem:[%s1831_s3 + $0x18] sm:$0xff] %v446_v3  ;;  %v307_v18 = vpop.f32.mrb[2].mxu0 }
  0xf1   :  { %802 = vst [vmem:[%s1831_s3 + $0x38] sm:$0xff] %v307_v18  ;;  %v309_v19 = vpop.f32.mrb[3].mxu0 }
  0xf2   :  { %803 = vst [vmem:[%s1831_s3 + $0x40] sm:$0xff] %v309_v19  ;;  %v450_v20 = vpop.f32.mrb[2].mxu1 }
  0xf3   :  { %804 = vst [vmem:[%s1831_s3 + $0x48] sm:$0xff] %v450_v20  ;;  %v452_v21 = vpop.f32.mrb[3].mxu1 }
  0xf4   :  { %805 = vst [vmem:[%s1831_s3 + $0x50] sm:$0xff] %v452_v21  ;;  %v313_v22 = vpop.f32.mrb[4].mxu0 }
  0xf5   :  { %809 = vst [vmem:[%s1831_s3 + $0x70] sm:$0xff] %v313_v22  ;;  %v315_v23 = vpop.f32.mrb[5].mxu0 }
  0xf6   :  { %810 = vst [vmem:[%s1831_s3 + $0x78] sm:$0xff] %v315_v23  ;;  %v456_v24 = vpop.f32.mrb[4].mxu1 }
  0xf7   :  { %811 = vst [vmem:[%s1831_s3 + $0x80] sm:$0xff] %v456_v24  ;;  %v458_v25 = vpop.f32.mrb[5].mxu1 }
  0xf8   :  { %812 = vst [vmem:[%s1831_s3 + $0x88] sm:$0xff] %v458_v25  ;;  %v319_v26 = vpop.f32.mrb[6].mxu0 }
  0xf9   :  { %816 = vst [vmem:[%s1831_s3 + $0xa8] sm:$0xff] %v319_v26  ;;  %v321_v27 = vpop.f32.mrb[7].mxu0 }
  0xfa   :  { %817 = vst [vmem:[%s1831_s3 + $0xb0] sm:$0xff] %v321_v27  ;;  %v462_v28 = vpop.f32.mrb[6].mxu1 }
  0xfb   :  { %818 = vst [vmem:[%s1831_s3 + $0xb8] sm:$0xff] %v462_v28  ;;  %v464_v29 = vpop.f32.mrb[7].mxu1 }
  0xfc   :  { %819 = vst [vmem:[%s1831_s3 + $0xc0] sm:$0xff] %v464_v29  ;;  %v325_v30 = vpop.f32.mrb[8].mxu0 }
  0xfd   :  { %823 = vst [vmem:[%s1831_s3 + $0xe0] sm:$0xff] %v325_v30  ;;  %v327_v31 = vpop.f32.mrb[9].mxu0 }
  0xfe   :  { %824 = vst [vmem:[%s1831_s3 + $0xe8] sm:$0xff] %v327_v31  ;;  %v468_v32 = vpop.f32.mrb[8].mxu1 }
  0xff   :  { %825 = vst [vmem:[%s1831_s3 + $0xf0] sm:$0xff] %v468_v32  ;;  %v470_v33 = vpop.f32.mrb[9].mxu1 }
 0x100   :  { %826 = vst [vmem:[%s1831_s3 + $0xf8] sm:$0xff] %v470_v33  ;;  %v331_v34 = vpop.f32.mrb[10].mxu0 }
 0x101   :  { %830 = vst [vmem:[%s1831_s3 + $0x118] sm:$0xff] %v331_v34  ;;  %v333_v35 = vpop.f32.mrb[11].mxu0 }
 0x102   :  { %831 = vst [vmem:[%s1831_s3 + $0x120] sm:$0xff] %v333_v35  ;;  %v474_v36 = vpop.f32.mrb[10].mxu1 }
 0x103   :  { %832 = vst [vmem:[%s1831_s3 + $0x128] sm:$0xff] %v474_v36  ;;  %v476_v37 = vpop.f32.mrb[11].mxu1 }
 0x104   :  { %833 = vst [vmem:[%s1831_s3 + $0x130] sm:$0xff] %v476_v37  ;;  %v337_v38 = vpop.f32.mrb[12].mxu0 }
 0x105   :  { %837 = vst [vmem:[%s1831_s3 + $0x150] sm:$0xff] %v337_v38  ;;  %v339_v39 = vpop.f32.mrb[13].mxu0 }
 0x106   :  { %838 = vst [vmem:[%s1831_s3 + $0x158] sm:$0xff] %v339_v39  ;;  %v480_v40 = vpop.f32.mrb[12].mxu1 }
 0x107   :  { %839 = vst [vmem:[%s1831_s3 + $0x160] sm:$0xff] %v480_v40  ;;  %v482_v41 = vpop.f32.mrb[13].mxu1 }
 0x108   :  { %840 = vst [vmem:[%s1831_s3 + $0x168] sm:$0xff] %v482_v41  ;;  %v343_v42 = vpop.f32.mrb[14].mxu0 }
 0x109   :  { %844 = vst [vmem:[%s1831_s3 + $0x188] sm:$0xff] %v343_v42  ;;  %v345_v43 = vpop.f32.mrb[15].mxu0 }
 0x10a   :  { %845 = vst [vmem:[%s1831_s3 + $0x190] sm:$0xff] %v345_v43  ;;  %v486_v44 = vpop.f32.mrb[14].mxu1 }
 0x10b   :  { %846 = vst [vmem:[%s1831_s3 + $0x198] sm:$0xff] %v486_v44  ;;  %v488_v45 = vpop.f32.mrb[15].mxu1 }
 0x10c   :  { %847 = vst [vmem:[%s1831_s3 + $0x1a0] sm:$0xff] %v488_v45  ;;  %v349_v46 = vpop.f32.mrb[16].mxu0 }
 0x10d   :  { %851 = vst [vmem:[%s1831_s3 + $0x1c0] sm:$0xff] %v349_v46  ;;  %v351_v47 = vpop.f32.mrb[17].mxu0 }
 0x10e   :  { %852 = vst [vmem:[%s1831_s3 + $0x1c8] sm:$0xff] %v351_v47  ;;  %v492_v48 = vpop.f32.mrb[16].mxu1 }
 0x10f   :  { %853 = vst [vmem:[%s1831_s3 + $0x1d0] sm:$0xff] %v492_v48  ;;  %v494_v49 = vpop.f32.mrb[17].mxu1 }
 0x110   :  { %854 = vst [vmem:[%s1831_s3 + $0x1d8] sm:$0xff] %v494_v49  ;;  %v355_v50 = vpop.f32.mrb[18].mxu0 }
 0x111   :  { %858 = vst [vmem:[%s1831_s3 + $0x1f8] sm:$0xff] %v355_v50  ;;  %v357_v51 = vpop.f32.mrb[19].mxu0 }
 0x112   :  { %859 = vst [vmem:[%s1831_s3 + $0x200] sm:$0xff] %v357_v51  ;;  %v498_v52 = vpop.f32.mrb[18].mxu1 }
 0x113   :  { %860 = vst [vmem:[%s1831_s3 + $0x208] sm:$0xff] %v498_v52  ;;  %v500_v53 = vpop.f32.mrb[19].mxu1 }
 0x114   :  { %861 = vst [vmem:[%s1831_s3 + $0x210] sm:$0xff] %v500_v53  ;;  %v361_v54 = vpop.f32.mrb[20].mxu0 }
 0x115   :  { %865 = vst [vmem:[%s1831_s3 + $0x230] sm:$0xff] %v361_v54  ;;  %v363_v55 = vpop.f32.mrb[21].mxu0 }
 0x116   :  { %866 = vst [vmem:[%s1831_s3 + $0x238] sm:$0xff] %v363_v55  ;;  %v504_v56 = vpop.f32.mrb[20].mxu1 }
 0x117   :  { %867 = vst [vmem:[%s1831_s3 + $0x240] sm:$0xff] %v504_v56  ;;  %v506_v57 = vpop.f32.mrb[21].mxu1 }
 0x118   :  { %868 = vst [vmem:[%s1831_s3 + $0x248] sm:$0xff] %v506_v57  ;;  %v367_v58 = vpop.f32.mrb[22].mxu0 }
 0x119   :  { %872 = vst [vmem:[%s1831_s3 + $0x268] sm:$0xff] %v367_v58  ;;  %v369_v59 = vpop.f32.mrb[23].mxu0 }
 0x11a   :  { %873 = vst [vmem:[%s1831_s3 + $0x270] sm:$0xff] %v369_v59  ;;  %v510_v60 = vpop.f32.mrb[22].mxu1 }
 0x11b   :  { %874 = vst [vmem:[%s1831_s3 + $0x278] sm:$0xff] %v510_v60  ;;  %v512_v62 = vpop.f32.mrb[23].mxu1 }
 0x11c   :  { %875 = vst [vmem:[%s1831_s3 + $0x280] sm:$0xff] %v512_v62  ;;  %v373_v63 = vpop.f32.mrb[24].mxu0 }
 0x11d   :  { %879 = vst [vmem:[%s1831_s3 + $0x2a0] sm:$0xff] %v373_v63  ;;  %v375_v0 = vpop.f32.mrb[25].mxu0 }
 0x11e   :  { %880 = vst [vmem:[%s1831_s3 + $0x2a8] sm:$0xff] %v375_v0  ;;  %v516_v1 = vpop.f32.mrb[24].mxu1 }
 0x11f   :  { %881 = vst [vmem:[%s1831_s3 + $0x2b0] sm:$0xff] %v516_v1  ;;  %v518_v2 = vpop.f32.mrb[25].mxu1 }
 0x120   :  { %882 = vst [vmem:[%s1831_s3 + $0x2b8] sm:$0xff] %v518_v2  ;;  %v587_v4 = vpop.f32.mrb[26].mxu0 }
 0x121   :  { %798 = vst [vmem:[%s1831_s3 + $0x20] sm:$0xff] %v587_v4  ;;  %v589_v5 = vpop.f32.mrb[27].mxu0 }
 0x122   :  { %799 = vst [vmem:[%s1831_s3 + $0x28] sm:$0xff] %v589_v5  ;;  %v730_v6 = vpop.f32.mrb[26].mxu1 }
 0x123   :  { %801 = vst.msk [vmem:[%s1831_s3 + $0x30] sm:$0xff] %vm800_vm2, %v730_v6  ;;  %v975_v7 = vpop.f32.mrb[27].mxu1 }
 0x124   :  { %v593_v8 = vpop.f32.mrb[28].mxu0 }
 0x125   :  { %806 = vst [vmem:[%s1831_s3 + $0x58] sm:$0xff] %v593_v8  ;;  %v595_v9 = vpop.f32.mrb[29].mxu0 }
 0x126   :  { %807 = vst [vmem:[%s1831_s3 + $0x60] sm:$0xff] %v595_v9  ;;  %v735_v10 = vpop.f32.mrb[28].mxu1 }
 0x127   :  { %808 = vst.msk [vmem:[%s1831_s3 + $0x68] sm:$0xff] %vm800_vm2, %v735_v10  ;;  %v978_v11 = vpop.f32.mrb[29].mxu1 }
 0x128   :  { %v599_v12 = vpop.f32.mrb[30].mxu0 }
 0x129   :  { %813 = vst [vmem:[%s1831_s3 + $0x90] sm:$0xff] %v599_v12  ;;  %v601_v13 = vpop.f32.mrb[31].mxu0 }
 0x12a   :  { %814 = vst [vmem:[%s1831_s3 + $0x98] sm:$0xff] %v601_v13  ;;  %v740_v14 = vpop.f32.mrb[30].mxu1 }
 0x12b   :  { %815 = vst.msk [vmem:[%s1831_s3 + $0xa0] sm:$0xff] %vm800_vm2, %v740_v14  ;;  %v981_v15 = vpop.f32.mrb[31].mxu1 }
 0x12c   :  { %v605_v61 = vpop.f32.mrb[32].mxu0 }
 0x12d   :  { %820 = vst [vmem:[%s1831_s3 + $0xc8] sm:$0xff] %v605_v61  ;;  %v607_v16 = vpop.f32.mrb[33].mxu0 }
 0x12e   :  { %821 = vst [vmem:[%s1831_s3 + $0xd0] sm:$0xff] %v607_v16  ;;  %v745_v17 = vpop.f32.mrb[32].mxu1 }
 0x12f   :  { %822 = vst.msk [vmem:[%s1831_s3 + $0xd8] sm:$0xff] %vm800_vm2, %v745_v17  ;;  %v984_v3 = vpop.f32.mrb[33].mxu1 }
 0x130   :  { %v611_v18 = vpop.f32.mrb[34].mxu0 }
 0x131   :  { %827 = vst [vmem:[%s1831_s3 + $0x100] sm:$0xff] %v611_v18  ;;  %v613_v19 = vpop.f32.mrb[35].mxu0 }
 0x132   :  { %828 = vst [vmem:[%s1831_s3 + $0x108] sm:$0xff] %v613_v19  ;;  %v750_v20 = vpop.f32.mrb[34].mxu1 }
 0x133   :  { %829 = vst.msk [vmem:[%s1831_s3 + $0x110] sm:$0xff] %vm800_vm2, %v750_v20  ;;  %v987_v21 = vpop.f32.mrb[35].mxu1 }
 0x134   :  { %v617_v22 = vpop.f32.mrb[36].mxu0 }
 0x135   :  { %834 = vst [vmem:[%s1831_s3 + $0x138] sm:$0xff] %v617_v22  ;;  %v619_v23 = vpop.f32.mrb[37].mxu0 }
 0x136   :  { %835 = vst [vmem:[%s1831_s3 + $0x140] sm:$0xff] %v619_v23  ;;  %v755_v24 = vpop.f32.mrb[36].mxu1 }
 0x137   :  { %836 = vst.msk [vmem:[%s1831_s3 + $0x148] sm:$0xff] %vm800_vm2, %v755_v24  ;;  %v990_v25 = vpop.f32.mrb[37].mxu1 }
 0x138   :  { %v623_v26 = vpop.f32.mrb[38].mxu0 }
 0x139   :  { %841 = vst [vmem:[%s1831_s3 + $0x170] sm:$0xff] %v623_v26  ;;  %v625_v27 = vpop.f32.mrb[39].mxu0 }
 0x13a   :  { %842 = vst [vmem:[%s1831_s3 + $0x178] sm:$0xff] %v625_v27  ;;  %v760_v28 = vpop.f32.mrb[38].mxu1 }
 0x13b   :  { %843 = vst.msk [vmem:[%s1831_s3 + $0x180] sm:$0xff] %vm800_vm2, %v760_v28  ;;  %v993_v29 = vpop.f32.mrb[39].mxu1 }
 0x13c   :  { %v629_v30 = vpop.f32.mrb[40].mxu0 }
 0x13d   :  { %848 = vst [vmem:[%s1831_s3 + $0x1a8] sm:$0xff] %v629_v30  ;;  %v631_v31 = vpop.f32.mrb[41].mxu0 }
 0x13e   :  { %849 = vst [vmem:[%s1831_s3 + $0x1b0] sm:$0xff] %v631_v31  ;;  %v765_v32 = vpop.f32.mrb[40].mxu1 }
 0x13f   :  { %850 = vst.msk [vmem:[%s1831_s3 + $0x1b8] sm:$0xff] %vm800_vm2, %v765_v32  ;;  %v996_v33 = vpop.f32.mrb[41].mxu1 }
 0x140   :  { %v635_v34 = vpop.f32.mrb[42].mxu0 }
 0x141   :  { %855 = vst [vmem:[%s1831_s3 + $0x1e0] sm:$0xff] %v635_v34  ;;  %v637_v35 = vpop.f32.mrb[43].mxu0 }
 0x142   :  { %856 = vst [vmem:[%s1831_s3 + $0x1e8] sm:$0xff] %v637_v35  ;;  %v770_v36 = vpop.f32.mrb[42].mxu1 }
 0x143   :  { %857 = vst.msk [vmem:[%s1831_s3 + $0x1f0] sm:$0xff] %vm800_vm2, %v770_v36  ;;  %v999_v37 = vpop.f32.mrb[43].mxu1 }
 0x144   :  { %v641_v38 = vpop.f32.mrb[44].mxu0 }
 0x145   :  { %862 = vst [vmem:[%s1831_s3 + $0x218] sm:$0xff] %v641_v38  ;;  %v643_v39 = vpop.f32.mrb[45].mxu0 }
 0x146   :  { %863 = vst [vmem:[%s1831_s3 + $0x220] sm:$0xff] %v643_v39  ;;  %v775_v40 = vpop.f32.mrb[44].mxu1 }
 0x147   :  { %864 = vst.msk [vmem:[%s1831_s3 + $0x228] sm:$0xff] %vm800_vm2, %v775_v40  ;;  %v1002_v41 = vpop.f32.mrb[45].mxu1 }
 0x148   :  { %v647_v42 = vpop.f32.mrb[46].mxu0 }
 0x149   :  { %869 = vst [vmem:[%s1831_s3 + $0x250] sm:$0xff] %v647_v42  ;;  %v649_v43 = vpop.f32.mrb[47].mxu0 }
 0x14a   :  { %870 = vst [vmem:[%s1831_s3 + $0x258] sm:$0xff] %v649_v43  ;;  %v780_v44 = vpop.f32.mrb[46].mxu1 }
 0x14b   :  { %871 = vst.msk [vmem:[%s1831_s3 + $0x260] sm:$0xff] %vm800_vm2, %v780_v44  ;;  %v1005_v45 = vpop.f32.mrb[47].mxu1 }
 0x14c   :  { %v653_v46 = vpop.f32.mrb[48].mxu0 }
 0x14d   :  { %876 = vst [vmem:[%s1831_s3 + $0x288] sm:$0xff] %v653_v46  ;;  %v655_v47 = vpop.f32.mrb[49].mxu0 }
 0x14e   :  { %877 = vst [vmem:[%s1831_s3 + $0x290] sm:$0xff] %v655_v47  ;;  %v785_v48 = vpop.f32.mrb[48].mxu1 }
 0x14f   :  { %878 = vst.msk [vmem:[%s1831_s3 + $0x298] sm:$0xff] %vm800_vm2, %v785_v48  ;;  %v1008_v49 = vpop.f32.mrb[49].mxu1 }
 0x150   :  { %v659_v50 = vpop.f32.mrb[50].mxu0 }
 0x151   :  { %883 = vst [vmem:[%s1831_s3 + $0x2c0] sm:$0xff] %v659_v50  ;;  %v661_v51 = vpop.f32.mrb[51].mxu0 }
 0x152   :  { %884 = vst [vmem:[%s1831_s3 + $0x2c8] sm:$0xff] %v661_v51  ;;  %v790_v52 = vpop.f32.mrb[50].mxu1 }
 0x153   :  { %885 = vst.msk [vmem:[%s1831_s3 + $0x2d0] sm:$0xff] %vm800_vm2, %v790_v52  ;;  %v1011_v53 = vpop.f32.mrb[51].mxu1 }

</bundles_post_ra>
